<compile_context>
chip_gen: v7x
topology: tpu7x:2x2x1
jax: 0.10.0
libtpu: 0.0.40
codegen_flags: <defaults>
</compile_context>

<pallas_src>
import jax
import jax.numpy as jnp
import numpy as np
from jax.experimental import pallas as pl
from jax.experimental.pallas import tpu as pltpu


H1 = 128       # fc1/fc2 output width
H2 = 64        # fc3 output width (zero-padded to H2_PAD inside the kernel)
H2_PAD = 128


def _round_up(x, m):
    return ((x + m - 1) // m) * m


# -----------------------------------------------------------------------------
# Kernel
# -----------------------------------------------------------------------------
def critic_kernel(s_ref, a_ref, w1_ref, w2_ref, b12_ref, w3_ref, b3_ref,
                  w4_ref, b4_ref, out_ref):
    cdt = w1_ref.dtype  # matmul feed dtype (f32 or bf16); accumulation is f32

    # Layer 1 (fc1 + fc2, fused bias):  h = relu(s @ W1 + a @ W2 + (b1 + b2))
    h = jnp.dot(s_ref[...].astype(cdt), w1_ref[...],
                preferred_element_type=jnp.float32)
    h = h + jnp.dot(a_ref[...].astype(cdt), w2_ref[...],
                    preferred_element_type=jnp.float32)
    h = jnp.maximum(h + b12_ref[...], 0.0)

    # Layer 2 (fc3, zero-padded to 128 lanes):  h2 = relu(h @ W3p + b3p)
    h2 = jnp.dot(h.astype(cdt), w3_ref[...],
                 preferred_element_type=jnp.float32) + b3_ref[...]
    h2 = jnp.maximum(h2, 0.0)

    # Layer 3 (fc4, N == 1): VPU multiply + XLU lane reduction instead of a
    # 1-wide MXU matmul; padded lanes of h2/w4 are exact zeros.
    q = jnp.sum(h2 * w4_ref[...], axis=-1, keepdims=True) + b4_ref[...]
    out_ref[...] = q.astype(out_ref.dtype)


# -----------------------------------------------------------------------------
# Wrapper
# -----------------------------------------------------------------------------
def critic_net_pallas(s, a, prepared, *, max_batch_tile=1024):
    """s: (B, state_dim), a: (B, action_dim) -> (B, 1) float32."""
    w1, w2, b12, w3p, b3p, w4p, b4 = prepared
    B, state_dim = s.shape
    action_dim = a.shape[1]

    # Batch tile: multiples of 16 keep sublane alignment for f32 and bf16.
    tb = min(_round_up(max_batch_tile, 16), _round_up(B, 16))
    b_pad = _round_up(B, tb)
    if b_pad != B:
        s = jnp.pad(s, ((0, b_pad - B), (0, 0)))
        a = jnp.pad(a, ((0, b_pad - B), (0, 0)))
    grid = (b_pad // tb,)

    s_spec = pl.BlockSpec((tb, state_dim), lambda i: (i, 0))
    a_spec = pl.BlockSpec((tb, action_dim), lambda i: (i, 0))
    out_spec = pl.BlockSpec((tb, 1), lambda i: (i, 0))
    # Weights / biases: full arrays with a constant block index -> stay
    # VMEM-resident across grid steps (not re-DMA'd).
    const_specs = [pl.BlockSpec(p.shape, lambda i: (0, 0))
                   for p in (w1, w2, b12, w3p, b3p, w4p, b4)]

    out = pl.pallas_call(
        critic_kernel,
        out_shape=jax.ShapeDtypeStruct((b_pad, 1), jnp.float32),
        grid=grid,
        in_specs=[s_spec, a_spec] + const_specs,
        out_specs=out_spec,
        compiler_params=pltpu.CompilerParams(
            dimension_semantics=("parallel",)),   # batch sharding on v7x 2-TC
    )(s, a, w1, w2, b12, w3p, b3p, w4p, b4)

    return out[:B]


# -----------------------------------------------------------------------------
# Parameters
# -----------------------------------------------------------------------------
def init_params(key, state_dim, action_dim):
    """Mirrors the PyTorch init: weights ~ N(0, 0.01); biases ~ N(0.01, 1)
    (torch `.normal_(0.01)` => mean 0.01, std 1). Weights are stored transposed
    as (in_features, out_features)."""
    ks = jax.random.split(key, 8)
    w = lambda k, shape: (0.01 * jax.random.normal(k, shape)).astype(jnp.float32)
    b = lambda k, shape: (0.01 + jax.random.normal(k, shape)).astype(jnp.float32)
    return dict(
        w1=w(ks[0], (state_dim, H1)),  b1=b(ks[1], (1, H1)),
        w2=w(ks[2], (action_dim, H1)), b2=b(ks[3], (1, H1)),
        w3=w(ks[4], (H1, H2)),         b3=b(ks[5], (1, H2)),
        w4=w(ks[6], (H2, 1)),          b4=b(ks[7], (1, 1)),
    )


def prepare_params(p, compute_dtype=jnp.float32):
    """One-time host-side fusion/padding into the kernel layout:
      * b1+b2 folded into one bias (fc1/fc2 share the ReLU)
      * W3/b3 zero-padded 64 -> 128 output lanes (lane-dense intermediates)
      * W4 transposed to a zero-padded (1, 128) row for the VPU reduction
    Matmul weights may be cast to bf16 for streaming; biases / fc4 stay f32."""
    w1 = p["w1"].astype(compute_dtype)
    w2 = p["w2"].astype(compute_dtype)
    b12 = (p["b1"] + p["b2"]).astype(jnp.float32)
    w3p = jnp.pad(p["w3"], ((0, 0), (0, H2_PAD - H2))).astype(compute_dtype)
    b3p = jnp.pad(p["b3"], ((0, 0), (0, H2_PAD - H2))).astype(jnp.float32)
    w4p = jnp.pad(p["w4"].T, ((0, 0), (0, H2_PAD - H2))).astype(jnp.float32)
    b4 = p["b4"].astype(jnp.float32)
    return (w1, w2, b12, w3p, b3p, w4p, b4)


def critic_net_ref(s, a, p):
    h = jnp.maximum(s @ p["w1"] + p["b1"] + a @ p["w2"] + p["b2"], 0.0)
    h = jnp.maximum(h @ p["w3"] + p["b3"], 0.0)
    return h @ p["w4"] + p["b4"]


# -----------------------------------------------------------------------------
# Test
# -----------------------------------------------------------------------------
if __name__ == "__main__":
    key = jax.random.PRNGKey(0)
    k_s, k_a, k_p, k_s2, k_a2 = jax.random.split(key, 5)

    state_dim, action_dim = 16, 4
    params = init_params(k_p, state_dim, action_dim)
    prepared_f32 = prepare_params(params, compute_dtype=jnp.float32)

    # --- small batch, f32, single grid step ---
    B = 8
    s = jax.random.normal(k_s, (B, state_dim), dtype=jnp.float32)
    a = jax.random.normal(k_a, (B, action_dim), dtype=jnp.float32)
    out = jax.block_until_ready(critic_net_pallas(s, a, prepared_f32))
    ref = critic_net_ref(s, a, params)
    # Tolerance is looser than bit-exact because the kernel fuses/reorders the
    # accumulations (fc1+fc2 fused bias, fc4 as a VPU reduction) vs the XLA ref.
    np.testing.assert_allclose(np.asarray(out), np.asarray(ref),
                               rtol=1e-3, atol=1e-3)
    assert out.shape == (B, 1)

    # --- larger batch with a ragged tail, multi-step pipelined grid, f32 ---
    B2 = 300
    s2 = jax.random.normal(k_s2, (B2, state_dim), dtype=jnp.float32)
    a2 = jax.random.normal(k_a2, (B2, action_dim), dtype=jnp.float32)
    out2 = jax.block_until_ready(
        critic_net_pallas(s2, a2, prepared_f32, max_batch_tile=128))
    ref2 = critic_net_ref(s2, a2, params)
    np.testing.assert_allclose(np.asarray(out2), np.asarray(ref2),
                               rtol=1e-3, atol=1e-3)
    assert out2.shape == (B2, 1)

    # --- same, bf16 weight streaming (f32 accumulation / f32 epilogue) ---
    prepared_bf16 = prepare_params(params, compute_dtype=jnp.bfloat16)
    out3 = jax.block_until_ready(
        critic_net_pallas(s2, a2, prepared_bf16, max_batch_tile=128))
    np.testing.assert_allclose(np.asarray(out3), np.asarray(ref2),
                               rtol=2e-2, atol=1e-2)

    print("KERNEL_OK")
</pallas_src>

<mosaic_0001>
module attributes {stable_mosaic.version = 11 : i64} {
  func.func @critic_kernel(%arg0: i32, %arg1: memref<16x16xf32, #tpu.memory_space<vmem>>, %arg2: memref<16x4xf32, #tpu.memory_space<vmem>>, %arg3: memref<16x128xf32, #tpu.memory_space<vmem>>, %arg4: memref<4x128xf32, #tpu.memory_space<vmem>>, %arg5: memref<1x128xf32, #tpu.memory_space<vmem>>, %arg6: memref<128x128xf32, #tpu.memory_space<vmem>>, %arg7: memref<1x128xf32, #tpu.memory_space<vmem>>, %arg8: memref<1x128xf32, #tpu.memory_space<vmem>>, %arg9: memref<1x1xf32, #tpu.memory_space<vmem>>, %arg10: memref<16x1xf32, #tpu.memory_space<vmem>>) attributes {dimension_semantics = [#tpu.dimension_semantics<parallel>], iteration_bounds = array<i64: 1>, scalar_prefetch = 0 : i64, scratch_operands = 0 : i64, tpu.core_type = #tpu.core_type<tc>, window_params = [{transform_indices = @transform_0, window_bounds = array<i64: 16, 16>}, {transform_indices = @transform_1, window_bounds = array<i64: 16, 4>}, {pipeline_mode = #tpu.pipeline_mode<synchronous>, transform_indices = @transform_2, window_bounds = array<i64: 16, 128>}, {pipeline_mode = #tpu.pipeline_mode<synchronous>, transform_indices = @transform_3, window_bounds = array<i64: 4, 128>}, {pipeline_mode = #tpu.pipeline_mode<synchronous>, transform_indices = @transform_4, window_bounds = array<i64: 1, 128>}, {pipeline_mode = #tpu.pipeline_mode<synchronous>, transform_indices = @transform_5, window_bounds = array<i64: 128, 128>}, {pipeline_mode = #tpu.pipeline_mode<synchronous>, transform_indices = @transform_6, window_bounds = array<i64: 1, 128>}, {pipeline_mode = #tpu.pipeline_mode<synchronous>, transform_indices = @transform_7, window_bounds = array<i64: 1, 128>}, {pipeline_mode = #tpu.pipeline_mode<synchronous>, transform_indices = @transform_8, window_bounds = array<i64: 1, 1>}, {transform_indices = @transform_9, window_bounds = array<i64: 16, 1>}]} {
    %c0 = arith.constant 0 : index
    %c0_0 = arith.constant 0 : index
    %0 = vector.load %arg1[%c0, %c0_0] : memref<16x16xf32, #tpu.memory_space<vmem>>, vector<16x16xf32>
    %c0_1 = arith.constant 0 : index
    %c0_2 = arith.constant 0 : index
    %1 = vector.load %arg3[%c0_1, %c0_2] : memref<16x128xf32, #tpu.memory_space<vmem>>, vector<16x128xf32>
    %cst = arith.constant dense<0.000000e+00> : vector<16x128xf32>
    %2 = tpu.matmul %0, %1, %cst {dimension_numbers = #tpu.dot_dimension_numbers<[1], [0], [0], [1], [0, 0, 1, 1], [], []>} : vector<16x16xf32>, vector<16x128xf32>, vector<16x128xf32> -> vector<16x128xf32>
    %c0_3 = arith.constant 0 : index
    %c0_4 = arith.constant 0 : index
    %3 = vector.load %arg2[%c0_3, %c0_4] : memref<16x4xf32, #tpu.memory_space<vmem>>, vector<16x4xf32>
    %c0_5 = arith.constant 0 : index
    %c0_6 = arith.constant 0 : index
    %4 = vector.load %arg4[%c0_5, %c0_6] : memref<4x128xf32, #tpu.memory_space<vmem>>, vector<4x128xf32>
    %cst_7 = arith.constant dense<0.000000e+00> : vector<16x128xf32>
    %5 = tpu.matmul %3, %4, %cst_7 {dimension_numbers = #tpu.dot_dimension_numbers<[1], [0], [0], [1], [0, 0, 1, 1], [], []>} : vector<16x4xf32>, vector<4x128xf32>, vector<16x128xf32> -> vector<16x128xf32>
    %6 = arith.addf %2, %5 : vector<16x128xf32>
    %c0_8 = arith.constant 0 : index
    %c0_9 = arith.constant 0 : index
    %7 = vector.load %arg5[%c0_8, %c0_9] : memref<1x128xf32, #tpu.memory_space<vmem>>, vector<1x128xf32>
    %8 = vector.broadcast %7 : vector<1x128xf32> to vector<16x128xf32>
    %9 = arith.addf %6, %8 : vector<16x128xf32>
    %cst_10 = arith.constant 0.000000e+00 : f32
    %10 = vector.broadcast %cst_10 : f32 to vector<16x128xf32>
    %11 = arith.maximumf %9, %10 : vector<16x128xf32>
    %c0_11 = arith.constant 0 : index
    %c0_12 = arith.constant 0 : index
    %12 = vector.load %arg6[%c0_11, %c0_12] : memref<128x128xf32, #tpu.memory_space<vmem>>, vector<128x128xf32>
    %cst_13 = arith.constant dense<0.000000e+00> : vector<16x128xf32>
    %13 = tpu.matmul %11, %12, %cst_13 {dimension_numbers = #tpu.dot_dimension_numbers<[1], [0], [0], [1], [0, 0, 1, 1], [], []>} : vector<16x128xf32>, vector<128x128xf32>, vector<16x128xf32> -> vector<16x128xf32>
    %c0_14 = arith.constant 0 : index
    %c0_15 = arith.constant 0 : index
    %14 = vector.load %arg7[%c0_14, %c0_15] : memref<1x128xf32, #tpu.memory_space<vmem>>, vector<1x128xf32>
    %15 = vector.broadcast %14 : vector<1x128xf32> to vector<16x128xf32>
    %16 = arith.addf %13, %15 : vector<16x128xf32>
    %cst_16 = arith.constant 0.000000e+00 : f32
    %17 = vector.broadcast %cst_16 : f32 to vector<16x128xf32>
    %18 = arith.maximumf %16, %17 : vector<16x128xf32>
    %c0_17 = arith.constant 0 : index
    %c0_18 = arith.constant 0 : index
    %19 = vector.load %arg8[%c0_17, %c0_18] : memref<1x128xf32, #tpu.memory_space<vmem>>, vector<1x128xf32>
    %20 = vector.broadcast %19 : vector<1x128xf32> to vector<16x128xf32>
    %21 = arith.mulf %18, %20 : vector<16x128xf32>
    %cst_19 = arith.constant dense<0.000000e+00> : vector<16xf32>
    %22 = vector.multi_reduction <add>, %21, %cst_19 [1] : vector<16x128xf32> to vector<16xf32>
    %23 = vector.shape_cast %22 : vector<16xf32> to vector<16x1xf32>
    %c0_20 = arith.constant 0 : index
    %c0_21 = arith.constant 0 : index
    %24 = vector.load %arg9[%c0_20, %c0_21] : memref<1x1xf32, #tpu.memory_space<vmem>>, vector<1x1xf32>
    %25 = vector.broadcast %24 : vector<1x1xf32> to vector<16x1xf32>
    %26 = arith.addf %23, %25 : vector<16x1xf32>
    %c0_22 = arith.constant 0 : index
    %c0_23 = arith.constant 0 : index
    %27 = vector.load %arg10[%c0_22, %c0_23] : memref<16x1xf32, #tpu.memory_space<vmem>>, vector<16x1xf32>
    tpu.vector_store %arg10[%c0_22, %c0_23], %26 {strides = array<i32>} : memref<16x1xf32, #tpu.memory_space<vmem>>, vector<16x1xf32>,
    return
  }
  func.func @transform_0(%arg0: i32) -> (i32, i32) {
    %c0_i32 = arith.constant 0 : i32
    %c0_i32_0 = arith.constant 0 : i32
    return %arg0, %c0_i32 : i32, i32
  }
  func.func @transform_1(%arg0: i32) -> (i32, i32) {
    %c0_i32 = arith.constant 0 : i32
    %c0_i32_0 = arith.constant 0 : i32
    return %arg0, %c0_i32 : i32, i32
  }
  func.func @transform_2(%arg0: i32) -> (i32, i32) {
    %c0_i32 = arith.constant 0 : i32
    %c0_i32_0 = arith.constant 0 : i32
    %c0_i32_1 = arith.constant 0 : i32
    return %c0_i32, %c0_i32_0 : i32, i32
  }
  func.func @transform_3(%arg0: i32) -> (i32, i32) {
    %c0_i32 = arith.constant 0 : i32
    %c0_i32_0 = arith.constant 0 : i32
    %c0_i32_1 = arith.constant 0 : i32
    return %c0_i32, %c0_i32_0 : i32, i32
  }
  func.func @transform_4(%arg0: i32) -> (i32, i32) {
    %c0_i32 = arith.constant 0 : i32
    %c0_i32_0 = arith.constant 0 : i32
    %c0_i32_1 = arith.constant 0 : i32
    return %c0_i32, %c0_i32_0 : i32, i32
  }
  func.func @transform_5(%arg0: i32) -> (i32, i32) {
    %c0_i32 = arith.constant 0 : i32
    %c0_i32_0 = arith.constant 0 : i32
    %c0_i32_1 = arith.constant 0 : i32
    return %c0_i32, %c0_i32_0 : i32, i32
  }
  func.func @transform_6(%arg0: i32) -> (i32, i32) {
    %c0_i32 = arith.constant 0 : i32
    %c0_i32_0 = arith.constant 0 : i32
    %c0_i32_1 = arith.constant 0 : i32
    return %c0_i32, %c0_i32_0 : i32, i32
  }
  func.func @transform_7(%arg0: i32) -> (i32, i32) {
    %c0_i32 = arith.constant 0 : i32
    %c0_i32_0 = arith.constant 0 : i32
    %c0_i32_1 = arith.constant 0 : i32
    return %c0_i32, %c0_i32_0 : i32, i32
  }
  func.func @transform_8(%arg0: i32) -> (i32, i32) {
    %c0_i32 = arith.constant 0 : i32
    %c0_i32_0 = arith.constant 0 : i32
    %c0_i32_1 = arith.constant 0 : i32
    return %c0_i32, %c0_i32_0 : i32, i32
  }
  func.func @transform_9(%arg0: i32) -> (i32, i32) {
    %c0_i32 = arith.constant 0 : i32
    %c0_i32_0 = arith.constant 0 : i32
    return %arg0, %c0_i32 : i32, i32
  }
}

</mosaic_0001>

<bundles_post_ra>
// kernel: tpu_custom_call.1
= control target key start
LH: loop header
LB: loop body
LE: loop exit
PB: predicated region body
PF: predicated region fallthrough
CT: control target
= control target key end

     0   :  { %s663_s0 = inlined_call_operand.vmem [shape: f32[16,16], index: 0, kind: input, shape index: {}]   ;;  %s664_s1 = inlined_call_operand.vmem [shape: f32[16,4], index: 1, kind: input, shape index: {}]   ;;  %s665_s2 = inlined_call_operand.hbm [shape: f32[16,128], index: 2, kind: input, shape index: {}]   ;;  %s666_s3 = inlined_call_operand.vmem [shape: f32[4,128], index: 3, kind: input, shape index: {}]   ;;  %s667_s4 = inlined_call_operand.vmem [shape: f32[1,128], index: 4, kind: input, shape index: {}]   ;;  %s668_s5 = inlined_call_operand.hbm [shape: f32[128,128], index: 5, kind: input, shape index: {}]   ;;  %s669_s6 = inlined_call_operand.vmem [shape: f32[1,128], index: 6, kind: input, shape index: {}]   ;;  %s670_s7 = inlined_call_operand.vmem [shape: f32[1,128], index: 7, kind: input, shape index: {}]   ;;  %s671_s8 = inlined_call_operand.<no memory space> [shape: f32[1,1], index: 8, kind: input, shape index: {}]   ;;  %s672_s9 = inlined_call_operand.vmem [shape: f32[16,1], index: 9, kind: output, shape index: {}]  }
   0x1   :  { %v14_v0 = vstv %s671_s8 }
   0x2   :  { %15 = vst [vmem:[#allocation2] sm:$0x1] %v14_v0 }
   0x3   :  { %16 = vsyncpa [#allocation4], 0 }
   0x4   :  { %17 = vsyncpa [#allocation6], 0  ;;  %s550_s11 = smov [#allocation3]   ;;  %s502_s15 = scalar_lea.hbm %s665_s2, 256 }
   0x5   :  { %s27_s12 = sshll.u32 %s550_s11, 4  ;;  %p503_p0 = scmp.ne.s32.totalorder %s665_s2, %s502_s15  ;;  %s28_s12 = int_to_ptr.vmem [resolvable:$true] %s27_s12 }
   0x6   :  { %p506_p1 = scmp.lt.u32.totalorder %s502_s15, %s665_s2 }
   0x8   :  { %p508_p2 = pnand %p506_p1, %p503_p0 }
   0xa   :  { %511 = shalt.err (!%p508_p2)
}
   0xb   :  { %s512_s8 = scalar_lea.vmem %s28_s12, 256  ;;  %p517_p4 = scmp.lt.s32.totalorder %s28_s12, %s28_s12 }
   0xc   :  { %p513_p3 = scmp.ne.s32.totalorder %s28_s12, %s512_s8  ;;  %p518_p5 = scmp.lt.s32.totalorder %s512_s8, %s512_s8 }
   0xe   :  { %p519_p6 = por %p518_p5, %p517_p4 }
  0x10   :  { %p520_p7 = pnand %p519_p6, %p513_p3 }
  0x12   :  { %523 = shalt.err (!%p520_p7)
}
  0x13   :  { %s551_s20 = smov 128   ;;  %s552_s21 = smov 8  }
  0x14   :  { %33 = dma.hbm_to_vmem [thread:$0]  %s665_s2, 256, %s28_s12, [#allocation4], %s551_s20, %s551_s20, %s552_s21  }
  0x15   :  { %s553_s24 = smov [#allocation5]   ;;  %s524_s28 = scalar_lea.hbm %s668_s5, 2048 }
  0x16   :  { %s43_s25 = sshll.u32 %s553_s24, 4  ;;  %p525_p8 = scmp.ne.s32.totalorder %s668_s5, %s524_s28  ;;  %s44_s25 = int_to_ptr.vmem [resolvable:$true] %s43_s25 }
  0x17   :  { %p528_p9 = scmp.lt.u32.totalorder %s524_s28, %s668_s5 }
  0x19   :  { %p530_p10 = pnand %p528_p9, %p525_p8 }
  0x1b   :  { %533 = shalt.err (!%p530_p10)
}
  0x1c   :  { %s534_s13 = scalar_lea.vmem %s44_s25, 2048  ;;  %p539_p12 = scmp.lt.s32.totalorder %s44_s25, %s44_s25 }
  0x1d   :  { %p535_p11 = scmp.ne.s32.totalorder %s44_s25, %s534_s13  ;;  %p540_p13 = scmp.lt.s32.totalorder %s534_s13, %s534_s13 }
  0x1f   :  { %p541_p0 = por %p540_p13, %p539_p12 }
  0x21   :  { %p542_p1 = pnand %p541_p0, %p535_p11 }
  0x23   :  { %545 = shalt.err (!%p542_p1)
}
  0x24   :  { %49 = dma.hbm_to_vmem [thread:$0]  %s668_s5, 2048, %s44_s25, [#allocation6], %s551_s20, %s551_s20, %s552_s21  }
  0x25   :  { %546 = dma.done.wait [#allocation4], 256  }
  0x26   :  { %547 = vsyncadd [#allocation4], 4294967040 }
  0x27   :  { %548 = dma.done.wait [#allocation6], 2048  }
  0x28   :  { %549 = vsyncadd [#allocation6], 4294965248  ;;  %vm76_vm0 = vcmask 1043456   ;;  %vm69_vm1 = vcmask 31744   ;;  %v68_v1 = vld [vmem:[%s666_s3] sm:$0xf] }
  0x29   :  { %v66_v2 = vld [vmem:[%s664_s1] sm:$0xff]  ;;  %v67_v3 = vld [vmem:[%s664_s1 + $0x8] sm:$0xff]  ;;  %413 = vmatprep.subr.msk.mxu0 %vm76_vm0, %v68_v1  ;;  %vm155_vm2 = vcmask 130048   ;;  %v248_v8 = vld [vmem:[#allocation5] sm:$0xff]  ;;  %vm370_vm3 = vcmask 7168  }
  0x2a   :  { %415 = vmatprep.mubr.msk.f32.mxu0 %vm69_vm1, %v66_v2  ;;  %v64_v4 = vld [vmem:[#allocation3] sm:$0xff]  ;;  %v65_v5 = vld [vmem:[#allocation3 + $0x8] sm:$0xff]  ;;  %414 = vmatpush3.msk.msra.mxu0 %vm76_vm0, %v68_v1  ;;  %v249_v9 = vld [vmem:[#allocation5 + $0x8] sm:$0xff] }
  0x2b   :  { %v62_v6 = vld [vmem:[%s663_s0] sm:$0xff]  ;;  %v460_v7 = vpack.c.bf16 %v65_v5, %v64_v4  ;;  %416 = vmatmul.mubr.msk.f32.vlgmr.msra.gmra.mrb[0].mxu0 %vm69_vm1, %v67_v3  ;;  %v464_v10 = vpack.c.bf16 %v249_v9, %v248_v8  ;;  %v251_v12 = vld [vmem:[#allocation5 + $0x18] sm:$0xff]  ;;  %v252_v14 = vld [vmem:[#allocation5 + $0x20] sm:$0xff] }
  0x2c   :  { %v250_v11 = vld [vmem:[#allocation5 + $0x10] sm:$0xff]  ;;  %422 = vmatprep.mubr.msk.f32.mxu0 %vm155_vm2, %v62_v6  ;;  %v253_v15 = vld [vmem:[#allocation5 + $0x28] sm:$0xff]  ;;  %v255_v19 = vld [vmem:[#allocation5 + $0x38] sm:$0xff] }
  0x2d   :  { %461 = vmatprep.subr.bf16.mxu0 %v460_v7  ;;  %v468_v13 = vpack.c.bf16 %v251_v12, %v250_v11  ;;  %465 = vmatprep.subr.bf16.mxu1 %v464_v10  ;;  %v472_v16 = vpack.c.bf16 %v253_v15, %v252_v14  ;;  %v63_v17 = vld [vmem:[%s663_s0 + $0x8] sm:$0xff]  ;;  %v256_v21 = vld [vmem:[#allocation5 + $0x40] sm:$0xff]  ;;  %v257_v22 = vld [vmem:[#allocation5 + $0x48] sm:$0xff] }
  0x2e   :  { %463 = vmatpush3.bf16.msra.mxu0 %v460_v7  ;;  %467 = vmatpush3.bf16.msra.mxu1 %v464_v10  ;;  %v254_v18 = vld [vmem:[#allocation5 + $0x30] sm:$0xff]  ;;  %v480_v23 = vpack.c.bf16 %v257_v22, %v256_v21  ;;  %v259_v25 = vld [vmem:[#allocation5 + $0x58] sm:$0xff]  ;;  %v260_v27 = vld [vmem:[#allocation5 + $0x60] sm:$0xff] }
  0x2f   :  { %469 = vmatprep.subr.bf16.mxu1 %v468_v13  ;;  %v476_v20 = vpack.c.bf16 %v255_v19, %v254_v18  ;;  %v258_v24 = vld [vmem:[#allocation5 + $0x50] sm:$0xff]  ;;  %v261_v28 = vld [vmem:[#allocation5 + $0x68] sm:$0xff]  ;;  %v263_v31 = vld [vmem:[#allocation5 + $0x78] sm:$0xff] }
  0x30   :  { %v484_v26 = vpack.c.bf16 %v259_v25, %v258_v24  ;;  %v488_v29 = vpack.c.bf16 %v261_v28, %v260_v27  ;;  %v262_v30 = vld [vmem:[#allocation5 + $0x70] sm:$0xff]  ;;  %v384_v33 = vld [vmem:[%s667_s4] ss:$0 sm:$0xff] }
  0x31   :  { %v492_v32 = vpack.c.bf16 %v263_v31, %v262_v30  ;;  %v385_v40 = vld [vmem:[%s669_s6] ss:$0 sm:$0xff] }
  0x32   :  { %471 = vmatpush3.bf16.msra.mxu1 %v468_v13  ;;  %v386_v45 = vld [vmem:[%s670_s7] ss:$0 sm:$0xff] }
  0x33   :  { %423 = vmatmul.mubr.msk.f32.vlgmr.msra.gmra.mrb[0].mxu0 %vm155_vm2, %v63_v17  ;;  %473 = vmatprep.subr.bf16.mxu1 %v472_v16  ;;  %v387_v50 = vld [vmem:[#allocation2] ss:$0 sm:$0xff] }
  0x36   :  { %475 = vmatpush3.bf16.msra.mxu1 %v472_v16 }
  0x37   :  { %477 = vmatprep.subr.bf16.mxu1 %v476_v20 }
  0x3a   :  { %479 = vmatpush3.bf16.msra.mxu1 %v476_v20 }
  0x3b   :  { %481 = vmatprep.subr.bf16.mxu1 %v480_v23 }
  0x3e   :  { %483 = vmatpush3.bf16.msra.mxu1 %v480_v23 }
  0x3f   :  { %485 = vmatprep.subr.bf16.mxu1 %v484_v26 }
  0x42   :  { %487 = vmatpush3.bf16.msra.mxu1 %v484_v26 }
  0x43   :  { %489 = vmatprep.subr.bf16.mxu1 %v488_v29 }
  0x46   :  { %491 = vmatpush3.bf16.msra.mxu1 %v488_v29 }
  0x47   :  { %493 = vmatprep.subr.bf16.mxu1 %v492_v32 }
  0x4a   :  { %495 = vmatpush3.bf16.msra.mxu1 %v492_v32 }
 0x106   :  { %v424_v34 = vpop.f32.mrb[0].mxu0 }
 0x107   :  { %v245_v35 = vadd.f32 %v424_v34, %v384_v33  ;;  %v228_v36 = vpop.f32.mrb[1].mxu0 }
 0x108   :  { %v244_v37 = vadd.f32 %v384_v33, %v228_v36 }
 0x109   :  { %v247_v39 = vmax.f32 %v245_v35, 0.0 }
 0x10a   :  { %v246_v38 = vmax.f32 %v244_v37, 0.0 }
 0x10c   :  { %457 = vmatprep.mubr.f32.mxu1 %v246_v38 }
 0x10d   :  { %458 = vmatmul.mubr.f32.vlgmr.msra.gmra.mrb[0].mxu1 %v247_v39 }
 0x1e0   :  { %v459_v41 = vpop.f32.mrb[0].mxu1 }
 0x1e1   :  { %v337_v42 = vpop.f32.mrb[1].mxu1  ;;  %v343_v43 = vadd.f32 %v459_v41, %v385_v40 }
 0x1e2   :  { %v338_v44 = vadd.f32 %v385_v40, %v337_v42 }
 0x1e3   :  { %v347_v47 = vmax.f32 %v343_v43, 0.0 }
 0x1e4   :  { %v346_v46 = vmax.f32 %v338_v44, 0.0 }
 0x1e5   :  { %v356_v49 = vmul.f32 %v386_v45, %v347_v47 }
 0x1e6   :  { %v355_v48 = vmul.f32 %v386_v45, %v346_v46 }
 0x1e8   :  { %357 = vadd.xlane.f32.xlu0 %v355_v48 }
 0x1ec   :  { %359 = vadd.xlane.f32.xlu0 %v356_v49 }
 0x275   :  { %v358_v51 = vpop.xlane.xlu0 %357 }
 0x276   :  { %v368_v52 = vadd.f32 %v387_v50, %v358_v51 }
 0x278   :  { %371 = vst.msk [vmem:[%s672_s9] sm:$0xff] %vm370_vm3, %v368_v52 }
 0x279   :  { %v360_v53 = vpop.xlane.xlu0 %359 }
 0x27a   :  { %v369_v54 = vadd.f32 %v387_v50, %v360_v53 }
 0x27c   :  { %372 = vst.msk [vmem:[%s672_s9 + $0x8] sm:$0xff] %vm370_vm3, %v369_v54 }
 0x27d   :  { %377 = vsyncpa [#allocation4], 1 }
 0x27e   :  { %378 = vsyncpa [#allocation6], 1 }

</bundles_post_ra>
